<compile_context>
chip_gen: v7x
topology: tpu7x:2x2x1
jax: 0.10.0
libtpu: 0.0.40
codegen_flags: <defaults>
</compile_context>

<pallas_src>
import functools
import math

import jax
import jax.numpy as jnp
from jax import lax
from jax.experimental import pallas as pl
from jax.experimental.pallas import tpu as pltpu


def _gaussian_noise_kernel(x_ref, o_ref, *, sigma, seed):
    tm, w = x_ref.shape
    hw = w // 2  # each (u1, u2) pair produces two normals: cos half + sin half

    # Unique 32-bit counter per generated pair, global across the whole grid.
    row = lax.broadcasted_iota(jnp.uint32, (tm, hw), 0)
    col = lax.broadcasted_iota(jnp.uint32, (tm, hw), 1)
    tile = pl.program_id(0).astype(jnp.uint32)
    ctr = (tile * jnp.uint32(tm) + row) * jnp.uint32(hw) + col

    # Static seed folded at trace time.
    s = jnp.uint32((int(seed) * 0x9E3779B9 + 0x7F4A7C15) & 0xFFFFFFFF)

    def mix(v):
        # lowbias32-style finalizer: good avalanche, only VPU int ops.
        v = v ^ (v >> jnp.uint32(16))
        v = v * jnp.uint32(0x7FEB352D)
        v = v ^ (v >> jnp.uint32(15))
        v = v * jnp.uint32(0x846CA68B)
        v = v ^ (v >> jnp.uint32(16))
        return v

    bits1 = mix(ctr ^ s)
    bits2 = mix(bits1 ^ (ctr + jnp.uint32(0x85EBCA6B)))

    # Exponent-bitcast uniforms: bits -> float32 in [1, 2).
    one_exp = jnp.uint32(0x3F800000)
    f1 = lax.bitcast_convert_type((bits1 >> jnp.uint32(9)) | one_exp, jnp.float32)
    f2 = lax.bitcast_convert_type((bits2 >> jnp.uint32(9)) | one_exp, jnp.float32)
    u1 = jnp.float32(2.0) - f1                      # (0, 1]  -> log() is safe
    theta = jnp.float32(2.0 * math.pi) * (f2 - jnp.float32(1.0))  # [0, 2*pi)

    # Box-Muller: use BOTH outputs (shared log/sqrt, one sin/cos each).
    r = jnp.sqrt(jnp.float32(-2.0) * jnp.log(u1))
    z_cos = r * jnp.cos(theta)
    z_sin = r * jnp.sin(theta)

    xv = x_ref[...].astype(jnp.float32)
    sig = jnp.float32(sigma)
    o_ref[:, :hw] = (xv[:, :hw] + sig * z_cos).astype(o_ref.dtype)
    o_ref[:, hw:] = (xv[:, hw:] + sig * z_sin).astype(o_ref.dtype)


def gaussian_noise(x, *, sigma=0.0, seed=0, training=True):
    """Pallas equivalent of GaussianNoise.forward.

    Returns x + sigma * N(0, 1) noise when training (sigma != 0), else x.
    Works for any shape; I/O stays in x.dtype.
    """
    if not training or sigma == 0:
        return x

    orig_shape = x.shape
    orig_dtype = x.dtype
    total = x.size

    # Lane-dense 2D slab: wide lane dim, sublane rows padded to the tile height.
    lanes = 1024                       # multiple of 256 (split into two halves)
    rows_needed = -(-total // lanes)
    tm = 256 if rows_needed >= 256 else -(-rows_needed // 8) * 8
    rows = -(-rows_needed // tm) * tm
    padded = rows * lanes

    flat = x.reshape(-1)
    if padded != total:
        flat = jnp.pad(flat, (0, padded - total), constant_values=1)
    x2d = flat.reshape(rows, lanes)

    grid = (rows // tm,)
    kernel = functools.partial(_gaussian_noise_kernel,
                               sigma=float(sigma), seed=int(seed))

    itemsize = jnp.dtype(orig_dtype).itemsize
    cost = pl.CostEstimate(
        flops=16 * padded,              # hash + Box-Muller arithmetic
        transcendentals=2 * padded,     # ~ (log + sqrt)/2 + sin/cos per element
        bytes_accessed=2 * padded * itemsize,
    )

    out2d = pl.pallas_call(
        kernel,
        out_shape=jax.ShapeDtypeStruct((rows, lanes), orig_dtype),
        grid=grid,
        in_specs=[pl.BlockSpec((tm, lanes), lambda i: (i, 0))],
        out_specs=pl.BlockSpec((tm, lanes), lambda i: (i, 0)),
        compiler_params=pltpu.CompilerParams(
            dimension_semantics=("parallel",),
            vmem_limit_bytes=32 * 1024 * 1024,
        ),
        cost_estimate=cost,
    )(x2d)

    return out2d.reshape(-1)[:total].reshape(orig_shape)


if __name__ == "__main__":
    key = jax.random.PRNGKey(0)
    # Small NCHW input consistent with a conv-style module: [B=2, C=4, H=16, W=16]
    x = jax.random.normal(key, (2, 4, 16, 16), dtype=jnp.float32)

    sigma = 0.1
    y = gaussian_noise(x, sigma=sigma, seed=1234, training=True)
    y = jax.block_until_ready(y)

    # Sanity checks: shape/dtype preserved, noise roughly N(0, sigma^2).
    assert y.shape == x.shape and y.dtype == x.dtype
    diff = y - x
    assert float(jnp.max(jnp.abs(diff))) > 0.0          # noise was added
    assert abs(float(jnp.mean(diff))) < 0.03            # ~zero mean
    std = float(jnp.std(diff))
    assert 0.05 < std < 0.2                              # ~sigma scale

    # Eval mode is identity.
    y_eval = jax.block_until_ready(gaussian_noise(x, sigma=sigma, training=False))
    assert bool(jnp.all(y_eval == x))

    print("KERNEL_OK")
</pallas_src>

<mosaic_0001>
module attributes {stable_mosaic.version = 11 : i64} {
  func.func @_gaussian_noise_kernel(%arg0: i32, %arg1: memref<8x1024xf32, #tpu.memory_space<vmem>>, %arg2: memref<8x1024xf32, #tpu.memory_space<vmem>>) attributes {dimension_semantics = [#tpu.dimension_semantics<parallel>], iteration_bounds = array<i64: 1>, scalar_prefetch = 0 : i64, scratch_operands = 0 : i64, tpu.core_type = #tpu.core_type<tc>, window_params = [{transform_indices = @transform_0, window_bounds = array<i64: 8, 1024>}, {transform_indices = @transform_1, window_bounds = array<i64: 8, 1024>}]} {
    %0 = tpu.iota {dimensions = array<i32: 0>} : vector<8x512xi32>
    %1 = tpu.iota {dimensions = array<i32: 1>} : vector<8x512xi32>
    %c8_i32 = arith.constant 8 : i32
    %2 = arith.muli %arg0, %c8_i32 : i32
    %3 = vector.broadcast %2 : i32 to vector<8x512xi32>
    %4 = arith.addi %3, %0 : vector<8x512xi32>
    %c512_i32 = arith.constant 512 : i32
    %5 = vector.broadcast %c512_i32 : i32 to vector<8x512xi32>
    %6 = arith.muli %4, %5 : vector<8x512xi32>
    %7 = arith.addi %6, %1 : vector<8x512xi32>
    %c649279959_i32 = arith.constant 649279959 : i32
    %8 = vector.broadcast %c649279959_i32 : i32 to vector<8x512xi32>
    %9 = arith.xori %7, %8 : vector<8x512xi32>
    %c16_i32 = arith.constant 16 : i32
    %10 = vector.broadcast %c16_i32 : i32 to vector<8x512xi32>
    %11 = arith.shrui %9, %10 : vector<8x512xi32>
    %12 = arith.xori %9, %11 : vector<8x512xi32>
    %c2146121005_i32 = arith.constant 2146121005 : i32
    %13 = vector.broadcast %c2146121005_i32 : i32 to vector<8x512xi32>
    %14 = arith.muli %12, %13 : vector<8x512xi32>
    %c15_i32 = arith.constant 15 : i32
    %15 = vector.broadcast %c15_i32 : i32 to vector<8x512xi32>
    %16 = arith.shrui %14, %15 : vector<8x512xi32>
    %17 = arith.xori %14, %16 : vector<8x512xi32>
    %c-2073254261_i32 = arith.constant -2073254261 : i32
    %18 = vector.broadcast %c-2073254261_i32 : i32 to vector<8x512xi32>
    %19 = arith.muli %17, %18 : vector<8x512xi32>
    %c16_i32_0 = arith.constant 16 : i32
    %20 = vector.broadcast %c16_i32_0 : i32 to vector<8x512xi32>
    %21 = arith.shrui %19, %20 : vector<8x512xi32>
    %22 = arith.xori %19, %21 : vector<8x512xi32>
    %c-2048144789_i32 = arith.constant -2048144789 : i32
    %23 = vector.broadcast %c-2048144789_i32 : i32 to vector<8x512xi32>
    %24 = arith.addi %7, %23 : vector<8x512xi32>
    %25 = arith.xori %22, %24 : vector<8x512xi32>
    %c16_i32_1 = arith.constant 16 : i32
    %26 = vector.broadcast %c16_i32_1 : i32 to vector<8x512xi32>
    %27 = arith.shrui %25, %26 : vector<8x512xi32>
    %28 = arith.xori %25, %27 : vector<8x512xi32>
    %c2146121005_i32_2 = arith.constant 2146121005 : i32
    %29 = vector.broadcast %c2146121005_i32_2 : i32 to vector<8x512xi32>
    %30 = arith.muli %28, %29 : vector<8x512xi32>
    %c15_i32_3 = arith.constant 15 : i32
    %31 = vector.broadcast %c15_i32_3 : i32 to vector<8x512xi32>
    %32 = arith.shrui %30, %31 : vector<8x512xi32>
    %33 = arith.xori %30, %32 : vector<8x512xi32>
    %c-2073254261_i32_4 = arith.constant -2073254261 : i32
    %34 = vector.broadcast %c-2073254261_i32_4 : i32 to vector<8x512xi32>
    %35 = arith.muli %33, %34 : vector<8x512xi32>
    %c16_i32_5 = arith.constant 16 : i32
    %36 = vector.broadcast %c16_i32_5 : i32 to vector<8x512xi32>
    %37 = arith.shrui %35, %36 : vector<8x512xi32>
    %38 = arith.xori %35, %37 : vector<8x512xi32>
    %c9_i32 = arith.constant 9 : i32
    %39 = vector.broadcast %c9_i32 : i32 to vector<8x512xi32>
    %40 = arith.shrui %22, %39 : vector<8x512xi32>
    %c1065353216_i32 = arith.constant 1065353216 : i32
    %41 = vector.broadcast %c1065353216_i32 : i32 to vector<8x512xi32>
    %42 = arith.ori %40, %41 : vector<8x512xi32>
    %43 = tpu.bitcast %42 : vector<8x512xi32> -> vector<8x512xf32>
    %c9_i32_6 = arith.constant 9 : i32
    %44 = vector.broadcast %c9_i32_6 : i32 to vector<8x512xi32>
    %45 = arith.shrui %38, %44 : vector<8x512xi32>
    %c1065353216_i32_7 = arith.constant 1065353216 : i32
    %46 = vector.broadcast %c1065353216_i32_7 : i32 to vector<8x512xi32>
    %47 = arith.ori %45, %46 : vector<8x512xi32>
    %48 = tpu.bitcast %47 : vector<8x512xi32> -> vector<8x512xf32>
    %cst = arith.constant 2.000000e+00 : f32
    %49 = vector.broadcast %cst : f32 to vector<8x512xf32>
    %50 = arith.subf %49, %43 : vector<8x512xf32>
    %cst_8 = arith.constant 1.000000e+00 : f32
    %51 = vector.broadcast %cst_8 : f32 to vector<8x512xf32>
    %52 = arith.subf %48, %51 : vector<8x512xf32>
    %cst_9 = arith.constant 6.28318548 : f32
    %53 = vector.broadcast %cst_9 : f32 to vector<8x512xf32>
    %54 = arith.mulf %53, %52 : vector<8x512xf32>
    %55 = math.log %50 : vector<8x512xf32>
    %cst_10 = arith.constant -2.000000e+00 : f32
    %56 = vector.broadcast %cst_10 : f32 to vector<8x512xf32>
    %57 = arith.mulf %56, %55 : vector<8x512xf32>
    %58 = math.sqrt %57 : vector<8x512xf32>
    %59 = math.cos %54 : vector<8x512xf32>
    %60 = arith.mulf %58, %59 : vector<8x512xf32>
    %61 = math.sin %54 : vector<8x512xf32>
    %62 = arith.mulf %58, %61 : vector<8x512xf32>
    %c0 = arith.constant 0 : index
    %c0_11 = arith.constant 0 : index
    %63 = vector.load %arg1[%c0, %c0_11] : memref<8x1024xf32, #tpu.memory_space<vmem>>, vector<8x1024xf32>
    %64 = vector.extract_strided_slice %63 {offsets = [0, 0], sizes = [8, 512], strides = [1, 1]} : vector<8x1024xf32> to vector<8x512xf32>
    %cst_12 = arith.constant 1.000000e-01 : f32
    %65 = vector.broadcast %cst_12 : f32 to vector<8x512xf32>
    %66 = arith.mulf %65, %60 : vector<8x512xf32>
    %67 = arith.addf %64, %66 : vector<8x512xf32>
    %c0_13 = arith.constant 0 : index
    %c0_14 = arith.constant 0 : index
    %68 = vector.load %arg2[%c0_13, %c0_14] : memref<8x1024xf32, #tpu.memory_space<vmem>>, vector<8x512xf32>
    tpu.vector_store %arg2[%c0_13, %c0_14], %67 {strides = array<i32>} : memref<8x1024xf32, #tpu.memory_space<vmem>>, vector<8x512xf32>,
    %69 = vector.extract_strided_slice %63 {offsets = [0, 512], sizes = [8, 512], strides = [1, 1]} : vector<8x1024xf32> to vector<8x512xf32>
    %cst_15 = arith.constant 1.000000e-01 : f32
    %70 = vector.broadcast %cst_15 : f32 to vector<8x512xf32>
    %71 = arith.mulf %70, %62 : vector<8x512xf32>
    %72 = arith.addf %69, %71 : vector<8x512xf32>
    %c0_16 = arith.constant 0 : index
    %c512 = arith.constant 512 : index
    %73 = vector.load %arg2[%c0_16, %c512] : memref<8x1024xf32, #tpu.memory_space<vmem>>, vector<8x512xf32>
    tpu.vector_store %arg2[%c0_16, %c512], %72 {strides = array<i32>} : memref<8x1024xf32, #tpu.memory_space<vmem>>, vector<8x512xf32>,
    return
  }
  func.func @transform_0(%arg0: i32) -> (i32, i32) {
    %c0_i32 = arith.constant 0 : i32
    %c0_i32_0 = arith.constant 0 : i32
    return %arg0, %c0_i32 : i32, i32
  }
  func.func @transform_1(%arg0: i32) -> (i32, i32) {
    %c0_i32 = arith.constant 0 : i32
    %c0_i32_0 = arith.constant 0 : i32
    return %arg0, %c0_i32 : i32, i32
  }
}

</mosaic_0001>

<bundles_post_ra>
// kernel: tpu_custom_call.1
= control target key start
LH: loop header
LB: loop body
LE: loop exit
PB: predicated region body
PF: predicated region fallthrough
CT: control target
= control target key end

     0   :  { %6 = vsyncpa [#allocation3], 0  ;;  %s1658_s0 = inlined_call_operand.hbm [shape: f32[8,1024], index: 0, kind: input, shape index: {}]   ;;  %s1659_s1 = inlined_call_operand.hbm [shape: f32[8,1024], index: 1, kind: output, shape index: {}]  }
   0x1   :  { %7 = vsyncpa [#allocation4], 0  ;;  %s1211_s6 = smov [#allocation2]   ;;  %s1163_s10 = scalar_lea.hbm %s1658_s0, 1024 }
   0x2   :  { %s14_s7 = sshll.u32 %s1211_s6, 4  ;;  %p1164_p0 = scmp.ne.s32.totalorder %s1658_s0, %s1163_s10  ;;  %s15_s7 = int_to_ptr.vmem [resolvable:$true] %s14_s7 }
   0x3   :  { %p1167_p1 = scmp.lt.u32.totalorder %s1163_s10, %s1658_s0 }
   0x5   :  { %p1169_p2 = pnand %p1167_p1, %p1164_p0 }
   0x7   :  { %1172 = shalt.err (!%p1169_p2)
}
   0x8   :  { %s1173_s15 = scalar_lea.vmem %s15_s7, 1024  ;;  %p1178_p4 = scmp.lt.s32.totalorder %s15_s7, %s15_s7 }
   0x9   :  { %p1174_p3 = scmp.ne.s32.totalorder %s15_s7, %s1173_s15  ;;  %p1179_p5 = scmp.lt.s32.totalorder %s1173_s15, %s1173_s15 }
   0xb   :  { %p1180_p6 = por %p1179_p5, %p1178_p4 }
   0xd   :  { %p1181_p7 = pnand %p1180_p6, %p1174_p3 }
   0xf   :  { %1184 = shalt.err (!%p1181_p7)
}
  0x10   :  { %17 = dma.hbm_to_vmem [thread:$0]  %s1658_s0, 1024, %s15_s7, [#allocation3]  }
  0x11   :  { %1207 = dma.done.wait [#allocation3], 1024  }
  0x12   :  { %1208 = vsyncadd [#allocation3], 4294966272  ;;  %v21_v0 = vlaneseq  ;;  %s1218_s0 = smov [#allocation5]  }
  0x13   :  { %s1062_s18 = sshll.u32 %s1218_s0, 4  ;;  %s1063_s18 = int_to_ptr.vmem [resolvable:$true] %s1062_s18 }
  0x14   :  { %v22_v1 = vshrl.u32 %v21_v0, 7  ;;  %v24_v2 = vand.u32 127, %v21_v0  ;;  %s1185_s19 = scalar_lea.vmem %s1063_s18, 1024  ;;  %p1190_p9 = scmp.lt.s32.totalorder %s1063_s18, %s1063_s18 }
  0x15   :  { %p1186_p8 = scmp.ne.s32.totalorder %s1063_s18, %s1185_s19  ;;  %p1191_p10 = scmp.lt.s32.totalorder %s1185_s19, %s1185_s19 }
  0x16   :  { %v31_v3 = vmul.u32 512, %v22_v1  ;;  %v25_v4 = vadd.s32 128, %v24_v2  ;;  %v26_v5 = vadd.s32 256, %v24_v2  ;;  %v27_v6 = vadd.s32 384, %v24_v2 }
  0x17   :  { %p1192_p11 = por %p1191_p10, %p1190_p9 }
  0x18   :  { %v32_v7 = vadd.s32 %v31_v3, %v24_v2  ;;  %v33_v8 = vadd.s32 %v31_v3, %v25_v4  ;;  %v34_v9 = vadd.s32 %v31_v3, %v26_v5  ;;  %v35_v10 = vadd.s32 %v31_v3, %v27_v6 }
  0x19   :  { %p1193_p12 = pnand %p1192_p11, %p1186_p8 }
  0x1a   :  { %v36_v11 = vxor.u32 649279959, %v32_v7  ;;  %v37_v12 = vxor.u32 649279959, %v33_v8  ;;  %v38_v13 = vxor.u32 649279959, %v34_v9 }
  0x1b   :  { %v39_v16 = vxor.u32 649279959, %v35_v10  ;;  %v72_v37 = vadd.s32 2246822507, %v32_v7  ;;  %v73_v41 = vadd.s32 2246822507, %v33_v8 }
  0x1c   :  { %v40_v14 = vshrl.u32 %v36_v11, 16  ;;  %v41_v15 = vshrl.u32 %v37_v12, 16  ;;  %v42_v17 = vshrl.u32 %v38_v13, 16  ;;  %v74_v44 = vadd.s32 2246822507, %v34_v9 }
  0x1d   :  { %v43_v20 = vshrl.u32 %v39_v16, 16  ;;  %v75_v49 = vadd.s32 2246822507, %v35_v10 }
  0x1e   :  { %v44_v18 = vxor.u32 %v40_v14, %v36_v11  ;;  %v45_v19 = vxor.u32 %v41_v15, %v37_v12  ;;  %v46_v21 = vxor.u32 %v42_v17, %v38_v13 }
  0x1f   :  { %v47_v24 = vxor.u32 %v43_v20, %v39_v16 }
  0x20   :  { %v48_v22 = vmul.u32 2146121005, %v44_v18  ;;  %v49_v23 = vmul.u32 2146121005, %v45_v19 }
  0x21   :  { %v50_v25 = vmul.u32 2146121005, %v46_v21  ;;  %v51_v28 = vmul.u32 2146121005, %v47_v24 }
  0x22   :  { %v52_v26 = vshrl.u32 %v48_v22, 15  ;;  %v53_v27 = vshrl.u32 %v49_v23, 15 }
  0x23   :  { %v54_v29 = vshrl.u32 %v50_v25, 15  ;;  %v55_v32 = vshrl.u32 %v51_v28, 15 }
  0x24   :  { %v56_v30 = vxor.u32 %v52_v26, %v48_v22  ;;  %v57_v31 = vxor.u32 %v53_v27, %v49_v23 }
  0x25   :  { %v58_v33 = vxor.u32 %v54_v29, %v50_v25  ;;  %v59_v36 = vxor.u32 %v55_v32, %v51_v28 }
  0x26   :  { %v60_v34 = vmul.u32 2221713035, %v56_v30  ;;  %v61_v35 = vmul.u32 2221713035, %v57_v31 }
  0x27   :  { %v62_v38 = vmul.u32 2221713035, %v58_v33  ;;  %v63_v42 = vmul.u32 2221713035, %v59_v36 }
  0x28   :  { %v64_v39 = vshrl.u32 %v60_v34, 16  ;;  %v65_v40 = vshrl.u32 %v61_v35, 16 }
  0x29   :  { %v66_v43 = vshrl.u32 %v62_v38, 16  ;;  %v67_v47 = vshrl.u32 %v63_v42, 16 }
  0x2a   :  { %v68_v45 = vxor.u32 %v64_v39, %v60_v34  ;;  %v69_v46 = vxor.u32 %v65_v40, %v61_v35 }
  0x2b   :  { %v70_v48 = vxor.u32 %v66_v43, %v62_v38  ;;  %v1241_v53 = vxor.u32 %v67_v47, %v63_v42 }
  0x2c   :  { %v76_v50 = vxor.u32 %v72_v37, %v68_v45  ;;  %v77_v51 = vxor.u32 %v73_v41, %v69_v46  ;;  %v112_v55 = vshrl.u32 %v68_v45, 9  ;;  %v113_v57 = vshrl.u32 %v69_v46, 9 }
  0x2d   :  { %v78_v52 = vxor.u32 %v74_v44, %v70_v48  ;;  %v79_v59 = vxor.u32 %v75_v49, %v1241_v53  ;;  %v114_v32 = vshrl.u32 %v70_v48, 9 }
  0x2e   :  { %v80_v54 = vshrl.u32 %v76_v50, 16  ;;  %v81_v56 = vshrl.u32 %v77_v51, 16  ;;  %v116_v0 = vor.u32 1065353216, %v112_v55  ;;  %v117_v3 = vor.u32 1065353216, %v113_v57 }
  0x2f   :  { %v82_v58 = vshrl.u32 %v78_v52, 16  ;;  %v83_v2 = vshrl.u32 %v79_v59, 16  ;;  %v118_v41 = vor.u32 1065353216, %v114_v32 }
  0x30   :  { %v84_v60 = vxor.u32 %v80_v54, %v76_v50  ;;  %v85_v61 = vxor.u32 %v81_v56, %v77_v51  ;;  %v136_v9 = vsub.f32 2.0, %v116_v0  ;;  %v137_v12 = vsub.f32 2.0, %v117_v3 }
  0x31   :  { %v86_v62 = vxor.u32 %v82_v58, %v78_v52  ;;  %v87_v11 = vxor.u32 %v83_v2, %v79_v59  ;;  %v138_v54 = vsub.f32 2.0, %v118_v41 }
  0x32   :  { %v88_v63 = vmul.u32 2146121005, %v84_v60  ;;  %v89_v1 = vmul.u32 2146121005, %v85_v61  ;;  %1131 = vlog2.f32 %v136_v9 }
  0x33   :  { %v90_v4 = vmul.u32 2146121005, %v86_v62  ;;  %v91_v19 = vmul.u32 2146121005, %v87_v11  ;;  %1133 = vlog2.f32 %v137_v12  ;;  %v1212_v11 = vmov 683565275  }
  0x34   :  { %v92_v5 = vshrl.u32 %v88_v63, 15  ;;  %v93_v6 = vshrl.u32 %v89_v1, 15  ;;  %1135 = vlog2.f32 %v138_v54 }
  0x35   :  { %v94_v7 = vshrl.u32 %v90_v4, 15  ;;  %v95_v26 = vshrl.u32 %v91_v19, 15 }
  0x36   :  { %v96_v8 = vxor.u32 %v92_v5, %v88_v63  ;;  %v97_v10 = vxor.u32 %v93_v6, %v89_v1 }
  0x37   :  { %v98_v13 = vxor.u32 %v94_v7, %v90_v4  ;;  %v99_v33 = vxor.u32 %v95_v26, %v91_v19  ;;  %v1216_v19 = vmov 920167782  }
  0x38   :  { %v100_v14 = vmul.u32 2221713035, %v96_v8  ;;  %v101_v15 = vmul.u32 2221713035, %v97_v10 }
  0x39   :  { %v102_v16 = vmul.u32 2221713035, %v98_v13  ;;  %v103_v42 = vmul.u32 2221713035, %v99_v33  ;;  %v1213_v13 = vmov 2475754826  }
  0x3a   :  { %v104_v17 = vshrl.u32 %v100_v14, 16  ;;  %v105_v18 = vshrl.u32 %v101_v15, 16 }
  0x3b   :  { %v106_v20 = vshrl.u32 %v102_v16, 16  ;;  %v107_v55 = vshrl.u32 %v103_v42, 16 }
  0x3c   :  { %v108_v21 = vxor.u32 %v104_v17, %v100_v14  ;;  %v109_v22 = vxor.u32 %v105_v18, %v101_v15  ;;  %v1132_v35 = vpop.eup %1131  ;;  %v1214_v15 = vmov 2131351028   ;;  %v1215_v17 = vmov 2102212464  }
  0x3d   :  { %v110_v23 = vxor.u32 %v106_v20, %v102_v16  ;;  %v1134_v38 = vpop.eup %1133  ;;  %v149_v43 = vmul.f32 0.6931472, %v1132_v35  ;;  %v1262_v0 = vxor.u32 %v107_v55, %v103_v42 }
  0x3e   :  { %v124_v24 = vshrl.u32 %v108_v21, 9  ;;  %v125_v25 = vshrl.u32 %v109_v22, 9  ;;  %v151_v48 = vmul.f32 0.6931472, %v1134_v38  ;;  %v1287_v38 = vpop.eup %1135 }
  0x3f   :  { %v126_v27 = vshrl.u32 %v110_v23, 9  ;;  %v1256_v56 = vmul.f32 -2.0, %v149_v43 }
  0x40   :  { %v128_v28 = vor.u32 1065353216, %v124_v24  ;;  %v129_v29 = vor.u32 1065353216, %v125_v25  ;;  %v1260_v60 = vmul.f32 -2.0, %v151_v48 }
  0x41   :  { %v130_v34 = vor.u32 1065353216, %v126_v27  ;;  %1137 = vrsqrt.f32 %v1256_v56  ;;  %v1217_v27 = vmov 1326507024   ;;  %vm162_vm12 = vcmp.eq.f32.partialorder %v1256_v56, inf }
  0x42   :  { %v1071_v30 = vadd.f32 -1.0, %v128_v28  ;;  %v1072_v31 = vadd.f32 -1.0, %v129_v29  ;;  %1139 = vrsqrt.f32 %v1260_v60 }
  0x43   :  { %v1073_v46 = vadd.f32 -1.0, %v130_v34 }
  0x44   :  { %v1244_v36 = vmul.f32 6.2831855, %v1071_v30  ;;  %v1246_v37 = vmul.f32 6.2831855, %v1072_v31 }
  0x45   :  { %v1258_v58 = vmul.f32 6.2831855, %v1073_v46 }
  0x46   :  { %v188_v39 = vand.u32 2147483647, %v1244_v36  ;;  %v191_v40 = vand.u32 2139095040, %v1244_v36  ;;  %v291_v44 = vand.u32 2147483647, %v1246_v37  ;;  %v294_v45 = vand.u32 2139095040, %v1246_v37 }
  0x47   :  { %v397_v2 = vand.u32 2139095040, %v1258_v58  ;;  %vm190_vm14 = vcmp.lt.s32.totalorder %v1244_v36, 0 }
  0x48   :  { %v192_v47 = vshrl.u32 %v191_v40, 23  ;;  %v195_v49 = vand.u32 8388607, %v188_v39  ;;  %v295_v50 = vshrl.u32 %v294_v45, 23  ;;  %v298_v51 = vand.u32 8388607, %v291_v44 }
  0x49   :  { %v1278_v21 = vshrl.u32 %v397_v2, 23 }
  0x4a   :  { %v1075_v52 = vadd.s32 4294967169, %v192_v47  ;;  %v1079_v57 = vadd.s32 4294967169, %v295_v50  ;;  %v196_v61 = vor.u32 8388608, %v195_v49  ;;  %v299_v62 = vor.u32 8388608, %v298_v51 }
  0x4b   :  { %v1293_v45 = vpop.eup %1137 }
  0x4c   :  { %v198_v59 = vadd.s32 1, %v1075_v52  ;;  %v301_v63 = vadd.s32 1, %v1079_v57  ;;  %v1267_v6 = vshll.u32 %v196_v61, 8  ;;  %v1271_v9 = vshll.u32 %v299_v62, 8  ;;  %v1298_v50 = vpop.eup %1139 }
  0x4e   :  { %vm199_vm0 = vcmp.gt.s32.totalorder %v198_v59, 0  ;;  %vm302_vm1 = vcmp.gt.s32.totalorder %v301_v63, 0 }
  0x4f   :  { %v200_v1 = vsel %vm199_vm0, %v198_v59, 0  ;;  %v303_v5 = vsel %vm302_vm1, %v301_v63, 0  ;;  %vm169_vm0 = vcmp.eq.f32.partialorder %v1260_v60, inf }
  0x50   :  { %v201_v3 = vshrl.u32 %v200_v1, 5  ;;  %v202_v4 = vand.u32 31, %v200_v1  ;;  %v1269_v7 = vshrl.u32 %v303_v5, 5  ;;  %v305_v8 = vand.u32 31, %v303_v5 }
  0x52   :  { %v203_v10 = vsub.s32 32, %v202_v4  ;;  %v205_v12 = vshll.u32 %v1212_v11, %v202_v4  ;;  %v208_v14 = vshll.u32 %v1213_v13, %v202_v4  ;;  %v211_v16 = vshll.u32 %v1214_v15, %v202_v4 }
  0x53   :  { %v214_v18 = vshll.u32 %v1215_v17, %v202_v4  ;;  %v217_v20 = vshll.u32 %v1216_v19, %v202_v4  ;;  %vm220_vm2 = vcmp.lt.s32.totalorder %v201_v3, 1  ;;  %vm221_vm3 = vcmp.lt.s32.totalorder %v201_v3, 2 }
  0x54   :  { %v204_v22 = vshrl.u32 %v1212_v11, %v203_v10  ;;  %v206_v23 = vshrl.u32 %v1213_v13, %v203_v10  ;;  %v209_v24 = vshrl.u32 %v1214_v15, %v203_v10  ;;  %v212_v25 = vshrl.u32 %v1215_v17, %v203_v10 }
  0x55   :  { %v215_v26 = vshrl.u32 %v1216_v19, %v203_v10  ;;  %v218_v28 = vshrl.u32 %v1217_v27, %v203_v10  ;;  %vm223_vm4 = vcmp.lt.s32.totalorder %v201_v3, 4  ;;  %v306_v32 = vsub.s32 32, %v305_v8 }
  0x56   :  { %v207_v29 = vor.u32 %v206_v23, %v205_v12  ;;  %v210_v30 = vor.u32 %v209_v24, %v208_v14  ;;  %v213_v31 = vor.u32 %v212_v25, %v211_v16  ;;  %vm222_vm5 = vcmp.lt.s32.totalorder %v201_v3, 3 }
  0x57   :  { %v216_v33 = vor.u32 %v215_v26, %v214_v18  ;;  %v219_v34 = vor.u32 %v218_v28, %v217_v20  ;;  %v308_v35 = vshll.u32 %v1212_v11, %v305_v8  ;;  %v311_v49 = vshll.u32 %v1213_v13, %v305_v8 }
  0x58   :  { %v224_v40 = vsel %vm220_vm2, %v204_v22, %v207_v29  ;;  %v225_v41 = vsel %vm223_vm4, %v213_v31, 2102212464  ;;  %v228_v42 = vsel %vm220_vm2, %v207_v29, %v210_v30  ;;  %v232_v43 = vsel %vm220_vm2, %v210_v30, %v213_v31 }
  0x59   :  { %v226_v46 = vsel %vm222_vm5, %v210_v30, %v225_v41  ;;  %v229_v47 = vsel %vm223_vm4, %v216_v33, 920167782  ;;  %v233_v48 = vsel %vm223_vm4, %v219_v34, 1326507024  ;;  %v307_v54 = vshrl.u32 %v1212_v11, %v306_v32 }
  0x5a   :  { %v230_v51 = vsel %vm222_vm5, %v213_v31, %v229_v47  ;;  %v234_v52 = vsel %vm222_vm5, %v216_v33, %v233_v48  ;;  %v309_v55 = vshrl.u32 %v1213_v13, %v306_v32  ;;  %v227_v57 = vsel %vm221_vm3, %v224_v40, %v226_v46 }
  0x5b   :  { %v231_v59 = vsel %vm221_vm3, %v228_v42, %v230_v51  ;;  %v235_v61 = vsel %vm221_vm3, %v232_v43, %v234_v52  ;;  %v312_v62 = vshrl.u32 %v1214_v15, %v306_v32  ;;  %v314_v12 = vshll.u32 %v1214_v15, %v305_v8 }
  0x5c   :  { %v1307_v63 = vmul.u32.u64.low %v1267_v6, %v235_v61  ;;  %v1308_v1 = vmul.u32.u64.high %v1267_v6, %v235_v61, %v1307_v63  ;;  %v1311_v2 = vmul.u32.u64.low %v1267_v6, %v231_v59  ;;  %v1312_v4 = vmul.u32.u64.high %v1267_v6, %v231_v59, %v1311_v2 }
  0x5d   :  { %v310_v5 = vor.u32 %v309_v55, %v308_v35  ;;  %v313_v10 = vor.u32 %v312_v62, %v311_v49  ;;  %v315_v14 = vshrl.u32 %v1215_v17, %v306_v32  ;;  %v317_v3 = vshll.u32 %v1215_v17, %v305_v8 }
  0x5e   :  { %v318_v16 = vshrl.u32 %v1216_v19, %v306_v32  ;;  %v320_v18 = vshll.u32 %v1216_v19, %v305_v8  ;;  %v321_v20 = vshrl.u32 %v1217_v27, %v306_v32  ;;  %v243_v22 = vmul.u32 %v1267_v6, %v227_v57 }
  0x5f   :  { %v316_v23 = vor.u32 %v315_v14, %v314_v12  ;;  %vm323_vm6 = vcmp.lt.s32.totalorder %v1269_v7, 1  ;;  %vm324_vm7 = vcmp.lt.s32.totalorder %v1269_v7, 2  ;;  %vm245_vm8 = vc.u32 %v1308_v1, %v1311_v2 }
  0x60   :  { %v246_v24 = vadd.s32 1, %v1312_v4  ;;  %v319_v25 = vor.u32 %v318_v16, %v317_v3  ;;  %vm325_vm9 = vcmp.lt.s32.totalorder %v1269_v7, 3  ;;  %v322_v26 = vor.u32 %v321_v20, %v320_v18 }
  0x61   :  { %vm326_vm10 = vcmp.lt.s32.totalorder %v1269_v7, 4  ;;  %v327_v8 = vsel %vm323_vm6, %v307_v54, %v310_v5  ;;  %v331_v28 = vsel %vm323_vm6, %v310_v5, %v313_v10  ;;  %v335_v31 = vsel %vm323_vm6, %v313_v10, %v316_v23 }
  0x62   :  { %v247_v6 = vsel %vm245_vm8, %v246_v24, %v1312_v4  ;;  %v328_v29 = vsel %vm326_vm10, %v316_v23, 2102212464  ;;  %v332_v30 = vsel %vm326_vm10, %v319_v25, 920167782  ;;  %v336_v35 = vsel %vm326_vm10, %v322_v26, 1326507024 }
  0x63   :  { %v248_v32 = vadd.s32 %v247_v6, %v243_v22  ;;  %v329_v33 = vsel %vm325_vm9, %v313_v10, %v328_v29  ;;  %v333_v34 = vsel %vm325_vm9, %v316_v23, %v332_v30  ;;  %v337_v42 = vsel %vm325_vm9, %v319_v25, %v336_v35 }
  0x64   :  { %v330_v40 = vsel %vm324_vm7, %v327_v8, %v329_v33  ;;  %v334_v41 = vsel %vm324_vm7, %v331_v28, %v333_v34  ;;  %v127_v43 = vshrl.u32 %v1262_v0, 9  ;;  %v338_v47 = vsel %vm324_vm7, %v335_v31, %v337_v42 }
  0x65   :  { %v249_v46 = vadd.s32 536870912, %v248_v32  ;;  %v1338_v48 = vmul.u32.u64.low %v1271_v9, %v334_v41  ;;  %v1339_v49 = vmul.u32.u64.high %v1271_v9, %v334_v41, %v1338_v48  ;;  %v1083_v55 = vadd.s32 4294967169, %v1278_v21 }
  0x66   :  { %v1342_v51 = vmul.u32.u64.low %v1271_v9, %v338_v47  ;;  %v1343_v52 = vmul.u32.u64.high %v1271_v9, %v338_v47, %v1342_v51  ;;  %v346_v57 = vmul.u32 %v1271_v9, %v330_v40  ;;  %v394_v61 = vand.u32 2147483647, %v1258_v58 }
  0x67   :  { %v250_v54 = vshrl.u32 %v249_v46, 30  ;;  %v349_v0 = vadd.s32 1, %v1339_v49  ;;  %v131_v7 = vor.u32 1065353216, %v127_v43  ;;  %v404_v62 = vadd.s32 1, %v1083_v55 }
  0x68   :  { %vm348_vm11 = vc.u32 %v1343_v52, %v1338_v48  ;;  %v115_v63 = vshrl.u32 %v1241_v53, 9  ;;  %v153_v21 = vmul.f32 0.6931472, %v1287_v38  ;;  %v161_v9 = vmul.f32 %v1293_v45, %v1256_v56  ;;  %v1029_v53 = vld [vmem:[#allocation2 + $0x28] sm:$0xff] }
  0x69   :  { %v251_v59 = vshll.u32 %v250_v54, 30  ;;  %v350_v5 = vsel %vm348_vm11, %v349_v0, %v1339_v49  ;;  %v165_v10 = vand.u32 2147483648, %v1256_v56  ;;  %vm405_vm13 = vcmp.gt.s32.totalorder %v404_v62, 0 }
  0x6a   :  { %v351_v12 = vadd.s32 %v350_v5, %v346_v57  ;;  %v401_v3 = vand.u32 8388607, %v394_v61  ;;  %v406_v16 = vsel %vm405_vm13, %v404_v62, 0  ;;  %v1074_v18 = vadd.f32 -1.0, %v131_v7 }
  0x6b   :  { %v1352_v4 = vsub.s32 %v248_v32, %v251_v59  ;;  %v274_v20 = vsub.s32 4, %v250_v54  ;;  %v172_v22 = vand.u32 2147483648, %v1260_v60  ;;  %v408_v24 = vand.u32 31, %v406_v16 }
  0x6c   :  { %v352_v23 = vadd.s32 536870912, %v351_v12  ;;  %v1367_v45 = vmul.f32 %v1298_v50, %v1260_v60  ;;  %v1369_v25 = vmul.f32 -2.0, %v153_v21  ;;  %v1374_v26 = vsel %vm162_vm12, %v1256_v56, %v161_v9 }
  0x6d   :  { %v254_v14 = vsub.s32 0, %v1352_v4  ;;  %v244_v8 = vadd.s32 %v1311_v2, %v1308_v1  ;;  %v409_v6 = vsub.s32 32, %v408_v24  ;;  %v1381_v30 = vadd.s32 %v1338_v48, %v1343_v52 }
  0x6e   :  { %v1378_v28 = vshrl.u32 %v352_v23, 30  ;;  %v402_v31 = vor.u32 8388608, %v401_v3  ;;  %v1383_v50 = vmul.f32 6.2831855, %v1074_v18  ;;  %v1387_v32 = vsel %vm190_vm14, %v274_v20, %v250_v54 }
  0x6f   :  { %v1076_v38 = vmin.u32 %v254_v14, %v1352_v4  ;;  %v411_v34 = vshll.u32 %v1212_v11, %v408_v24  ;;  %v414_v1 = vshll.u32 %v1213_v13, %v408_v24  ;;  %v412_v35 = vshrl.u32 %v1213_v13, %v409_v6 }
  0x70   :  { %v354_v33 = vshll.u32 %v1378_v28, 30  ;;  %v417_v40 = vshll.u32 %v1214_v15, %v408_v24  ;;  %v420_v41 = vshll.u32 %v1215_v17, %v408_v24  ;;  %v415_v43 = vshrl.u32 %v1214_v15, %v409_v6 }
  0x71   :  { %v256_v29 = vclz %v1076_v38  ;;  %v418_v46 = vshrl.u32 %v1215_v17, %v409_v6  ;;  %v421_v47 = vshrl.u32 %v1216_v19, %v409_v6  ;;  %v407_v48 = vshrl.u32 %v406_v16, 5 }
  0x72   :  { %v1395_v42 = vsub.s32 %v351_v12, %v354_v33  ;;  %v423_v49 = vshll.u32 %v1216_v19, %v408_v24  ;;  %v424_v51 = vshrl.u32 %v1217_v27, %v409_v6  ;;  %v410_v55 = vshrl.u32 %v1212_v11, %v409_v6 }
  0x73   :  { %v1077_v2 = vadd.s32 4294967294, %v256_v29  ;;  %v1404_v57 = vshll.u32 %v402_v31, 8  ;;  %v413_v62 = vor.u32 %v412_v35, %v411_v34  ;;  %v416_v21 = vor.u32 %v415_v43, %v414_v1 }
  0x74   :  { %v357_v54 = vsub.s32 0, %v1395_v42  ;;  %v419_v9 = vor.u32 %v418_v46, %v417_v40  ;;  %v422_v12 = vor.u32 %v421_v47, %v420_v41  ;;  %v425_v16 = vor.u32 %v424_v51, %v423_v49 }
  0x75   :  { %vm1078_vm15 = vcmp.lt.s32.totalorder %v1077_v2, 0  ;;  %vm426_vm1 = vcmp.lt.s32.totalorder %v407_v48, 1  ;;  %vm1411_vm2 = vcmp.le.f32.partialorder %v188_v39, 0.7853982  ;;  %vm427_vm3 = vcmp.lt.s32.totalorder %v407_v48, 2 }
  0x76   :  { %v259_v52 = vsel %vm1078_vm15, 0, %v1077_v2  ;;  %v1080_v5 = vmin.u32 %v357_v54, %v1395_v42  ;;  %vm428_vm4 = vcmp.lt.s32.totalorder %v407_v48, 3  ;;  %vm429_vm5 = vcmp.lt.s32.totalorder %v407_v48, 4 }
  0x77   :  { %v260_v59 = vsub.s32 32, %v259_v52  ;;  %v261_v0 = vshll.u32 %v1352_v4, %v259_v52  ;;  %v264_v7 = vsub.s32 4294967266, %v259_v52  ;;  %vm293_vm6 = vcmp.lt.s32.totalorder %v1246_v37, 0 }
  0x78   :  { %v359_v4 = vclz %v1080_v5  ;;  %v430_v24 = vsel %vm426_vm1, %v410_v55, %v413_v62  ;;  %v431_v38 = vsel %vm429_vm5, %v419_v9, 2102212464  ;;  %v434_v39 = vsel %vm426_vm1, %v413_v62, %v416_v21 }
  0x79   :  { %v262_v14 = vshrl.u32 %v244_v8, %v260_v59  ;;  %v265_v3 = vadd.s32 127, %v264_v7  ;;  %v432_v6 = vsel %vm428_vm4, %v416_v21, %v431_v38  ;;  %v435_v29 = vsel %vm429_vm5, %v422_v12, 920167782 }
  0x7a   :  { %v1081_v8 = vadd.s32 4294967294, %v359_v4  ;;  %vm164_vm7 = vcmp.eq.f32.partialorder %v1256_v56, 0.0  ;;  %v436_v34 = vsel %vm428_vm4, %v419_v9, %v435_v29  ;;  %v438_v1 = vsel %vm426_vm1, %v416_v21, %v419_v9 }
  0x7b   :  { %v263_v20 = vor.u32 %v262_v14, %v261_v0  ;;  %v266_v23 = vshll.u32 %v265_v3, 23  ;;  %vm1426_vm8 = vcmp.le.f32.partialorder %v291_v44, 0.7853982  ;;  %v377_v35 = vsub.s32 4, %v1378_v28 }
  0x7c   :  { %vm1082_vm9 = vcmp.lt.s32.totalorder %v1081_v8, 0  ;;  %v433_v40 = vsel %vm427_vm3, %v430_v24, %v432_v6  ;;  %v439_v41 = vsel %vm429_vm5, %v425_v16, 1326507024  ;;  %vm171_vm10 = vcmp.eq.f32.partialorder %v1260_v60, 0.0 }
  0x7d   :  { %v267_v31 = vor.u32 4788187, %v266_v23  ;;  %v270_v33 = vcvt.s32.f32 %v263_v20  ;;  %v362_v46 = vsel %vm1082_vm9, 0, %v1081_v8  ;;  %v437_v47 = vsel %vm427_vm3, %v434_v39, %v436_v34 }
  0x7e   :  { %v440_v49 = vsel %vm428_vm4, %v422_v12, %v439_v41  ;;  %v363_v51 = vsub.s32 32, %v362_v46  ;;  %v364_v44 = vshll.u32 %v1395_v42, %v362_v46  ;;  %v367_v52 = vsub.s32 4294967266, %v362_v46 }
  0x7f   :  { %v268_v43 = vand.u32 2147483647, %v267_v31  ;;  %v441_v54 = vsel %vm427_vm3, %v438_v1, %v440_v49  ;;  %v500_v7 = vand.u32 2139095040, %v1383_v50  ;;  %v277_v42 = vsel %vm1411_vm2, 0, %v1387_v32 }
  0x80   :  { %v1439_v59 = vmul.u32.u64.low %v1404_v57, %v441_v54  ;;  %v1440_v0 = vmul.u32.u64.high %v1404_v57, %v441_v54, %v1439_v59  ;;  %v365_v62 = vshrl.u32 %v1381_v30, %v363_v51  ;;  %v368_v5 = vadd.s32 127, %v367_v52 }
  0x81   :  { %v271_v55 = vmul.f32 %v270_v33, %v268_v43  ;;  %v1445_v21 = vmul.u32.u64.low %v1404_v57, %v437_v47  ;;  %v1446_v9 = vmul.u32.u64.high %v1404_v57, %v437_v47, %v1445_v21  ;;  %v170_v48 = vsel %vm169_vm0, %v1260_v60, %v1367_v45 }
  0x82   :  { %v501_v14 = vshrl.u32 %v500_v7, 23  ;;  %v366_v3 = vor.u32 %v365_v62, %v364_v44  ;;  %v369_v16 = vshll.u32 %v368_v5, 23  ;;  %v378_v30 = vsel %vm293_vm6, %v377_v35, %v1378_v28 }
  0x83   :  { %v272_v12 = vxor.u32 2147483648, %v271_v55  ;;  %v497_v4 = vand.u32 2147483647, %v1383_v50  ;;  %v449_v23 = vmul.u32 %v1404_v57, %v433_v40  ;;  %vm451_vm11 = vc.u32 %v1440_v0, %v1445_v21 }
  0x84   :  { %v1087_v32 = vadd.s32 4294967169, %v501_v14  ;;  %v370_v24 = vor.u32 4788187, %v369_v16  ;;  %v373_v38 = vcvt.s32.f32 %v366_v3  ;;  %v452_v8 = vadd.s32 1, %v1446_v9 }
  0x85   :  { %v273_v20 = vsel %vm190_vm14, %v272_v12, %v271_v55  ;;  %v1467_v28 = vand.u32 3, %v277_v42  ;;  %v380_v6 = vsel %vm1426_vm8, 0, %v378_v30  ;;  %v1476_v57 = vsel %vm164_vm7, %v165_v10, %v1374_v26 }
  0x86   :  { %v276_v45 = vsel %vm1411_vm2, %v1244_v36, %v273_v20  ;;  %v507_v39 = vadd.s32 1, %v1087_v32  ;;  %v371_v18 = vand.u32 2147483647, %v370_v24  ;;  %v453_v29 = vsel %vm451_vm11, %v452_v8, %v1446_v9 }
  0x87   :  { %1141 = vcosq.f32 %v276_v45  ;;  %v454_v31 = vadd.s32 %v453_v29, %v449_v23  ;;  %v504_v33 = vand.u32 8388607, %v497_v4  ;;  %v697_v34 = vadd.s32 3, %v277_v42 }
  0x88   :  { %1143 = vsinq.f32 %v276_v45  ;;  %vm508_vm12 = vcmp.gt.s32.totalorder %v507_v39, 0  ;;  %v1485_v1 = vsel %vm171_vm10, %v172_v22, %v170_v48  ;;  %v374_v35 = vmul.f32 %v373_v38, %v371_v18 }
  0x89   :  { %v509_v56 = vsel %vm508_vm12, %v507_v39, 0  ;;  %v801_v10 = vadd.s32 3, %v380_v6  ;;  %vm282_vm13 = vcmp.lt.s32.totalorder %v1467_v28, 2  ;;  %vm283_vm14 = vcmp.eq.s32.totalorder %v1467_v28, 0 }
  0x8a   :  { %v455_v26 = vadd.s32 536870912, %v454_v31  ;;  %v511_v40 = vand.u32 31, %v509_v56  ;;  %vm280_vm15 = vweird.f32 %v1244_v36  ;;  %vm286_vm0 = vcmp.eq.s32.totalorder %v1467_v28, 2 }
  0x8b   :  { %v375_v41 = vxor.u32 2147483648, %v374_v35  ;;  %v1491_v43 = vand.u32 3, %v380_v6  ;;  %v1494_v60 = vadd.s32 %v1445_v21, %v1440_v0  ;;  %v505_v46 = vor.u32 8388608, %v504_v33 }
  0x8c   :  { %v1496_v22 = vshrl.u32 %v455_v26, 30  ;;  %v512_v47 = vsub.s32 32, %v511_v40  ;;  %v1498_v49 = vand.u32 3, %v697_v34  ;;  %v514_v44 = vshll.u32 %v1212_v11, %v511_v40 }
  0x8d   :  { %v376_v51 = vsel %vm293_vm6, %v375_v41, %v374_v35  ;;  %v517_v52 = vshll.u32 %v1213_v13, %v511_v40  ;;  %v1504_v54 = vand.u32 3, %v801_v10  ;;  %v520_v0 = vshll.u32 %v1214_v15, %v511_v40 }
  0x8e   :  { %v379_v55 = vsel %vm1426_vm8, %v1246_v37, %v376_v51  ;;  %v457_v59 = vshll.u32 %v1496_v22, 30  ;;  %v523_v7 = vshll.u32 %v1215_v17, %v511_v40  ;;  %v515_v62 = vshrl.u32 %v1213_v13, %v512_v47 }
  0x8f   :  { %1145 = vcosq.f32 %v379_v55  ;;  %v518_v5 = vshrl.u32 %v1214_v15, %v512_v47  ;;  %v521_v21 = vshrl.u32 %v1215_v17, %v512_v47  ;;  %v510_v2 = vshrl.u32 %v509_v56, 5 }
  0x90   :  { %1147 = vsinq.f32 %v379_v55  ;;  %v1517_v12 = vsub.s32 %v454_v31, %v457_v59  ;;  %v524_v42 = vshrl.u32 %v1216_v19, %v512_v47  ;;  %vm389_vm1 = vcmp.eq.s32.totalorder %v1491_v43, 2  ;;  %v1024_v31 = vld [vmem:[#allocation2] sm:$0xff] }
  0x91   :  { %v1515_v9 = vpop.eup %1141  ;;  %v516_v3 = vor.u32 %v515_v62, %v514_v44  ;;  %v519_v13 = vor.u32 %v518_v5, %v517_v52  ;;  %v526_v15 = vshll.u32 %v1216_v19, %v511_v40  ;;  %vm386_vm2 = vcmp.eq.s32.totalorder %v1491_v43, 0 }
  0x92   :  { %v1520_v48 = vpop.eup %1143  ;;  %v287_v14 = vxor.u32 2147483648, %v1515_v9  ;;  %v460_v16 = vsub.s32 0, %v1517_v12  ;;  %v522_v30 = vor.u32 %v521_v21, %v520_v0  ;;  %v1528_v20 = vshll.u32 %v505_v46, 8 }
  0x93   :  { %v284_v17 = vxor.u32 2147483648, %v1520_v48  ;;  %vm385_vm3 = vcmp.lt.s32.totalorder %v1491_v43, 2  ;;  %v513_v32 = vshrl.u32 %v1212_v11, %v512_v47  ;;  %v525_v19 = vor.u32 %v524_v42, %v523_v7 }
  0x94   :  { %v288_v23 = vsel %vm286_vm0, %v287_v14, %v1520_v48  ;;  %v527_v45 = vshrl.u32 %v1217_v27, %v512_v47  ;;  %vm383_vm4 = vweird.f32 %v1246_v37  ;;  %v1084_v38 = vmin.u32 %v460_v16, %v1517_v12 }
  0x95   :  { %v285_v24 = vsel %vm283_vm14, %v1515_v9, %v284_v17  ;;  %vm529_vm5 = vcmp.lt.s32.totalorder %v510_v2, 1  ;;  %vm700_vm6 = vcmp.eq.s32.totalorder %v1498_v49, 0  ;;  %vm530_vm7 = vcmp.lt.s32.totalorder %v510_v2, 2 }
  0x96   :  { %v289_v8 = vsel %vm282_vm13, %v285_v24, %v288_v23  ;;  %v528_v6 = vor.u32 %v527_v45, %v526_v15  ;;  %vm699_vm8 = vcmp.lt.s32.totalorder %v1498_v49, 2  ;;  %vm703_vm9 = vcmp.eq.s32.totalorder %v1498_v49, 2 }
  0x97   :  { %v290_v11 = vsel %vm280_vm15, nan, %v289_v8  ;;  %v462_v27 = vclz %v1084_v38  ;;  %vm531_vm10 = vcmp.lt.s32.totalorder %v510_v2, 3  ;;  %vm532_vm11 = vcmp.lt.s32.totalorder %v510_v2, 4  ;;  %v1025_v8 = vld [vmem:[#allocation2 + $0x8] sm:$0xff] }
  0x98   :  { %vm804_vm12 = vcmp.eq.s32.totalorder %v1504_v54, 0  ;;  %v600_v39 = vmul.f32 %v290_v11, %v1476_v57  ;;  %v533_v18 = vsel %vm529_vm5, %v513_v32, %v516_v3  ;;  %v534_v28 = vsel %vm532_vm11, %v522_v30, 2102212464 }
  0x99   :  { %v537_v29 = vsel %vm529_vm5, %v516_v3, %v519_v13  ;;  %v1085_v33 = vadd.s32 4294967294, %v462_v27  ;;  %v535_v34 = vsel %vm531_vm10, %v519_v13, %v534_v28  ;;  %v538_v35 = vsel %vm532_vm11, %v525_v19, 920167782  ;;  %v1146_v10 = vpop.eup %1145 }
  0x9a   :  { %v541_v56 = vsel %vm529_vm5, %v519_v13, %v522_v30  ;;  %vm807_vm13 = vcmp.eq.s32.totalorder %v1504_v54, 2  ;;  %v1032_v26 = vmul.f32 0.1, %v600_v39  ;;  %v536_v40 = vsel %vm530_vm7, %v533_v18, %v535_v34  ;;  %v1148_v47 = vpop.eup %1147  ;;  %v1028_v18 = vld [vmem:[#allocation2 + $0x20] sm:$0xff] }
  0x9b   :  { %v539_v41 = vsel %vm531_vm10, %v522_v30, %v538_v35  ;;  %v542_v46 = vsel %vm532_vm11, %v528_v6, 1326507024  ;;  %vm803_vm14 = vcmp.lt.s32.totalorder %v1504_v54, 2  ;;  %v390_v51 = vxor.u32 2147483648, %v1146_v10 }
  0x9c   :  { %vm1086_vm0 = vcmp.lt.s32.totalorder %v1085_v33, 0  ;;  %v540_v44 = vsel %vm530_vm7, %v537_v29, %v539_v41  ;;  %v543_v52 = vsel %vm531_vm10, %v525_v19, %v542_v46  ;;  %v1036_v55 = vadd.f32 %v1032_v26, %v1024_v31 }
  0x9d   :  { %v387_v59 = vxor.u32 2147483648, %v1148_v47  ;;  %v465_v0 = vsel %vm1086_vm0, 0, %v1085_v33  ;;  %v544_v7 = vsel %vm530_vm7, %v541_v56, %v543_v52  ;;  %v391_v62 = vsel %vm389_vm1, %v390_v51, %v1148_v47 }
  0x9e   :  { %v466_v5 = vsub.s32 32, %v465_v0  ;;  %v467_v21 = vshll.u32 %v1517_v12, %v465_v0  ;;  %v470_v42 = vsub.s32 4294967266, %v465_v0  ;;  %1040 = vst [vmem:[#allocation5] sm:$0xff] %v1036_v55  ;;  %v552_v16 = vmul.u32 %v1528_v20, %v536_v40 }
  0x9f   :  { %v388_v3 = vsel %vm386_vm2, %v1146_v10, %v387_v59  ;;  %v1572_v13 = vmul.u32.u64.low %v1528_v20, %v544_v7  ;;  %v1573_v15 = vmul.u32.u64.high %v1528_v20, %v544_v7, %v1572_v13  ;;  %v702_v12 = vsel %vm700_vm6, %v1515_v9, %v284_v17 }
  0xa0   :  { %v392_v2 = vsel %vm385_vm3, %v388_v3, %v391_v62  ;;  %v468_v30 = vshrl.u32 %v1494_v60, %v466_v5  ;;  %v471_v23 = vadd.s32 127, %v470_v42  ;;  %v705_v43 = vsel %vm703_vm9, %v287_v14, %v1520_v48 }
  0xa1   :  { %v393_v32 = vsel %vm383_vm4, nan, %v392_v2  ;;  %v1585_v19 = vmul.u32.u64.low %v1528_v20, %v540_v44  ;;  %v1586_v45 = vmul.u32.u64.high %v1528_v20, %v540_v44, %v1585_v19  ;;  %v706_v17 = vsel %vm699_vm8, %v702_v12, %v705_v43 }
  0xa2   :  { %v601_v60 = vmul.f32 %v393_v32, %v1485_v1  ;;  %v469_v24 = vor.u32 %v468_v30, %v467_v21  ;;  %v472_v38 = vshll.u32 %v471_v23, 23  ;;  %v707_v20 = vsel %vm280_vm15, nan, %v706_v17 }
  0xa3   :  { %v1597_v6 = vadd.s32 %v1585_v19, %v1573_v15  ;;  %vm554_vm1 = vc.u32 %v1573_v15, %v1585_v19  ;;  %v806_v9 = vsel %vm804_vm12, %v1146_v10, %v387_v59  ;;  %v1020_v27 = vmul.f32 %v707_v20, %v1476_v57 }
  0xa4   :  { %v1033_v48 = vmul.f32 0.1, %v601_v60  ;;  %v473_v14 = vor.u32 4788187, %v472_v38  ;;  %v476_v11 = vcvt.s32.f32 %v469_v24  ;;  %1149 = vrsqrt.f32 %v1369_v25 }
  0xa5   :  { %v480_v49 = vsub.s32 4, %v1496_v22  ;;  %v555_v39 = vadd.s32 1, %v1586_v45  ;;  %v809_v28 = vsel %vm807_vm13, %v390_v51, %v1148_v47  ;;  %v1044_v31 = vmul.f32 0.1, %v1020_v27 }
  0xa6   :  { %v1037_v36 = vadd.f32 %v1033_v48, %v1025_v8  ;;  %v474_v29 = vand.u32 2147483647, %v473_v14  ;;  %v810_v33 = vsel %vm803_vm14, %v806_v9, %v809_v28  ;;  %v119_v34 = vor.u32 1065353216, %v115_v63 }
  0xa7   :  { %v556_v57 = vsel %vm554_vm1, %v555_v39, %v1586_v45  ;;  %v811_v35 = vsel %vm383_vm4, nan, %v810_v33  ;;  %v1048_v26 = vadd.f32 %v1044_v31, %v1028_v18  ;;  %vm395_vm15 = vcmp.le.f32.partialorder %v394_v61, 0.7853982  ;;  %v1026_v39 = vld [vmem:[#allocation2 + $0x10] sm:$0xff] }
  0xa8   :  { %1041 = vst [vmem:[#allocation5 + $0x8] sm:$0xff] %v1037_v36  ;;  %v477_v56 = vmul.f32 %v476_v11, %v474_v29  ;;  %v557_v10 = vadd.s32 %v556_v57, %v552_v16  ;;  %v1021_v40 = vmul.f32 %v811_v35, %v1485_v1  ;;  %vm396_vm2 = vcmp.lt.s32.totalorder %v1258_v58, 0  ;;  %v1030_v31 = vld [vmem:[#allocation2 + $0x30] sm:$0xff] }
  0xa9   :  { %v481_v54 = vsel %vm396_vm2, %v480_v49, %v1496_v22  ;;  %1052 = vst [vmem:[#allocation5 + $0x20] sm:$0xff] %v1048_v26  ;;  %v139_v47 = vsub.f32 2.0, %v119_v34  ;;  %vm176_vm3 = vcmp.eq.f32.partialorder %v1369_v25, inf  ;;  %v179_v42 = vand.u32 2147483648, %v1369_v25 }
  0xaa   :  { %v478_v63 = vxor.u32 2147483648, %v477_v56  ;;  %v558_v41 = vadd.s32 536870912, %v557_v10  ;;  %v1045_v46 = vmul.f32 0.1, %v1021_v40  ;;  %v483_v1 = vsel %vm395_vm15, 0, %v481_v54 }
  0xab   :  { %v905_v22 = vadd.s32 3, %v483_v1  ;;  %v487_v62 = vand.u32 3, %v483_v1  ;;  %vm178_vm4 = vcmp.eq.f32.partialorder %v1369_v25, 0.0  ;;  %vm486_vm7 = vweird.f32 %v1258_v58 }
  0xac   :  { %v479_v37 = vsel %vm396_vm2, %v478_v63, %v477_v56  ;;  %v1624_v51 = vshrl.u32 %v558_v41, 30  ;;  %v1049_v44 = vadd.f32 %v1045_v46, %v1029_v53  ;;  %vm499_vm13 = vcmp.lt.s32.totalorder %v1383_v50, 0 }
  0xad   :  { %v482_v52 = vsel %vm395_vm15, %v1258_v58, %v479_v37  ;;  %v906_v21 = vand.u32 3, %v905_v22  ;;  %vm492_vm5 = vcmp.eq.s32.totalorder %v487_v62, 2  ;;  %vm489_vm8 = vcmp.eq.s32.totalorder %v487_v62, 0 }
  0xae   :  { %1151 = vcosq.f32 %v482_v52  ;;  %v560_v61 = vshll.u32 %v1624_v51, 30  ;;  %1053 = vst [vmem:[#allocation5 + $0x28] sm:$0xff] %v1049_v44  ;;  %v1150_v55 = vpop.eup %1149  ;;  %vm488_vm9 = vcmp.lt.s32.totalorder %v487_v62, 2  ;;  %vm498_vm14 = vcmp.le.f32.partialorder %v497_v4, 0.7853982 }
  0xaf   :  { %1153 = vsinq.f32 %v482_v52  ;;  %v175_v0 = vmul.f32 %v1150_v55, %v1369_v25  ;;  %vm911_vm6 = vcmp.eq.s32.totalorder %v906_v21, 2  ;;  %vm908_vm11 = vcmp.eq.s32.totalorder %v906_v21, 0 }
  0xb0   :  { %1155 = vlog2.f32 %v139_v47  ;;  %v561_v59 = vsub.s32 %v557_v10, %v560_v61  ;;  %vm907_vm12 = vcmp.lt.s32.totalorder %v906_v21, 2 }
  0xb1   :  { %v177_v3 = vsel %vm176_vm3, %v1369_v25, %v175_v0 }
  0xb2   :  { %v563_v7 = vsub.s32 0, %v561_v59  ;;  %v180_v30 = vsel %vm178_vm4, %v179_v42, %v177_v3 }
  0xb4   :  { %v1088_v5 = vmin.u32 %v563_v7, %v561_v59 }
  0xb6   :  { %v565_v13 = vclz %v1088_v5 }
  0xb8   :  { %v1152_v15 = vpop.eup %1151  ;;  %v1089_v16 = vadd.s32 4294967294, %v565_v13 }
  0xb9   :  { %v1154_v2 = vpop.eup %1153  ;;  %v493_v23 = vxor.u32 2147483648, %v1152_v15 }
  0xba   :  { %v1156_v12 = vpop.eup %1155  ;;  %v490_v32 = vxor.u32 2147483648, %v1154_v2  ;;  %vm1090_vm10 = vcmp.lt.s32.totalorder %v1089_v16, 0 }
  0xbb   :  { %v494_v19 = vsel %vm492_vm5, %v493_v23, %v1154_v2  ;;  %v568_v45 = vsel %vm1090_vm10, 0, %v1089_v16  ;;  %v913_v25 = vsel %vm911_vm6, %v493_v23, %v1154_v2  ;;  %v155_v8 = vmul.f32 0.6931472, %v1156_v12  ;;  %v1027_v2 = vld [vmem:[#allocation2 + $0x18] sm:$0xff] }
  0xbc   :  { %v491_v43 = vsel %vm489_vm8, %v1152_v15, %v490_v32  ;;  %v569_v60 = vsub.s32 32, %v568_v45  ;;  %v570_v24 = vshll.u32 %v561_v59, %v568_v45  ;;  %v573_v38 = vsub.s32 4294967266, %v568_v45 }
  0xbd   :  { %v495_v17 = vsel %vm488_vm9, %v491_v43, %v494_v19  ;;  %v910_v20 = vsel %vm908_vm11, %v1152_v15, %v490_v32  ;;  %v159_v33 = vmul.f32 -2.0, %v155_v8 }
  0xbe   :  { %v496_v9 = vsel %vm486_vm7, nan, %v495_v17  ;;  %v571_v48 = vshrl.u32 %v1597_v6, %v569_v60  ;;  %v574_v14 = vadd.s32 127, %v573_v38  ;;  %v914_v11 = vsel %vm907_vm12, %v910_v20, %v913_v25 }
  0xbf   :  { %v602_v27 = vmul.f32 %v496_v9, %v180_v30  ;;  %v915_v49 = vsel %vm486_vm7, nan, %v914_v11  ;;  %v583_v6 = vsub.s32 4, %v1624_v51  ;;  %1157 = vrsqrt.f32 %v159_v33 }
  0xc0   :  { %v572_v18 = vor.u32 %v571_v48, %v570_v24  ;;  %v575_v28 = vshll.u32 %v574_v14, 23  ;;  %v1022_v36 = vmul.f32 %v915_v49, %v180_v30  ;;  %vm183_vm0 = vcmp.eq.f32.partialorder %v159_v33, inf  ;;  %v1031_v30 = vld [vmem:[#allocation2 + $0x38] sm:$0xff] }
  0xc1   :  { %v1034_v29 = vmul.f32 0.1, %v602_v27  ;;  %v584_v53 = vsel %vm499_vm13, %v583_v6, %v1624_v51  ;;  %vm185_vm1 = vcmp.eq.f32.partialorder %v159_v33, 0.0  ;;  %v186_v61 = vand.u32 2147483648, %v159_v33 }
  0xc2   :  { %v576_v34 = vor.u32 4788187, %v575_v28  ;;  %v579_v57 = vcvt.s32.f32 %v572_v18  ;;  %v1046_v35 = vmul.f32 0.1, %v1022_v36  ;;  %v586_v41 = vsel %vm498_vm14, 0, %v584_v53 }
  0xc3   :  { %v1038_v56 = vadd.f32 %v1034_v29, %v1026_v39  ;;  %v1009_v46 = vadd.s32 3, %v586_v41  ;;  %v590_v47 = vand.u32 3, %v586_v41  ;;  %vm589_vm7 = vweird.f32 %v1383_v50 }
  0xc4   :  { %v577_v10 = vand.u32 2147483647, %v576_v34  ;;  %v1050_v26 = vadd.f32 %v1046_v35, %v1030_v31 }
  0xc5   :  { %1042 = vst [vmem:[#allocation5 + $0x10] sm:$0xff] %v1038_v56  ;;  %v1010_v44 = vand.u32 3, %v1009_v46  ;;  %vm595_vm15 = vcmp.eq.s32.totalorder %v590_v47, 2  ;;  %vm592_vm3 = vcmp.eq.s32.totalorder %v590_v47, 0  ;;  %vm591_vm5 = vcmp.lt.s32.totalorder %v590_v47, 2 }
  0xc6   :  { %v580_v40 = vmul.f32 %v579_v57, %v577_v10  ;;  %1054 = vst [vmem:[#allocation5 + $0x30] sm:$0xff] %v1050_v26 }
  0xc7   :  { %vm1015_vm2 = vcmp.eq.s32.totalorder %v1010_v44, 2  ;;  %vm1012_vm4 = vcmp.eq.s32.totalorder %v1010_v44, 0  ;;  %vm1011_vm6 = vcmp.lt.s32.totalorder %v1010_v44, 2 }
  0xc8   :  { %v581_v58 = vxor.u32 2147483648, %v580_v40 }
  0xc9   :  { %v1158_v37 = vpop.eup %1157 }
  0xca   :  { %v582_v63 = vsel %vm499_vm13, %v581_v58, %v580_v40  ;;  %v182_v52 = vmul.f32 %v1158_v37, %v159_v33 }
  0xcb   :  { %v585_v54 = vsel %vm498_vm14, %v1383_v50, %v582_v63 }
  0xcc   :  { %1159 = vcosq.f32 %v585_v54  ;;  %v184_v55 = vsel %vm183_vm0, %v159_v33, %v182_v52 }
  0xcd   :  { %1161 = vsinq.f32 %v585_v54  ;;  %v187_v7 = vsel %vm185_vm1, %v186_v61, %v184_v55 }
  0xd6   :  { %v1160_v1 = vpop.eup %1159 }
  0xd7   :  { %v1162_v4 = vpop.eup %1161  ;;  %v596_v51 = vxor.u32 2147483648, %v1160_v1 }
  0xd8   :  { %v593_v59 = vxor.u32 2147483648, %v1162_v4 }
  0xd9   :  { %v597_v22 = vsel %vm595_vm15, %v596_v51, %v1162_v4  ;;  %v1017_v0 = vsel %vm1015_vm2, %v596_v51, %v1162_v4 }
  0xda   :  { %v594_v62 = vsel %vm592_vm3, %v1160_v1, %v593_v59  ;;  %v1014_v5 = vsel %vm1012_vm4, %v1160_v1, %v593_v59 }
  0xdb   :  { %v598_v21 = vsel %vm591_vm5, %v594_v62, %v597_v22  ;;  %v1018_v42 = vsel %vm1011_vm6, %v1014_v5, %v1017_v0 }
  0xdc   :  { %v599_v3 = vsel %vm589_vm7, nan, %v598_v21  ;;  %v1019_v13 = vsel %vm589_vm7, nan, %v1018_v42 }
  0xdd   :  { %v603_v15 = vmul.f32 %v599_v3, %v187_v7  ;;  %v1023_v16 = vmul.f32 %v1019_v13, %v187_v7 }
  0xdf   :  { %v1035_v23 = vmul.f32 0.1, %v603_v15  ;;  %v1047_v12 = vmul.f32 0.1, %v1023_v16 }
  0xe1   :  { %v1039_v32 = vadd.f32 %v1035_v23, %v1027_v2  ;;  %v1051_v19 = vadd.f32 %v1047_v12, %v1031_v30 }
  0xe3   :  { %1043 = vst [vmem:[#allocation5 + $0x18] sm:$0xff] %v1039_v32  ;;  %1055 = vst [vmem:[#allocation5 + $0x38] sm:$0xff] %v1051_v19 }
  0xe4   :  { %1196 = shalt.err (!%p1193_p12)
}
  0xe5   :  { %s1197_s22 = scalar_lea.hbm %s1659_s1, 1024 }
  0xe6   :  { %p1198_p13 = scmp.ne.s32.totalorder %s1659_s1, %s1197_s22  ;;  %p1201_p0 = scmp.lt.u32.totalorder %s1197_s22, %s1659_s1 }
  0xe8   :  { %p1203_p1 = pnand %p1201_p0, %p1198_p13 }
  0xea   :  { %1206 = shalt.err (!%p1203_p1)
}
  0xeb   :  { %1065 = dma.vmem_to_hbm [thread:$0]  %s1063_s18, 1024, %s1659_s1, [#allocation4]  }
  0xec   :  { %1209 = dma.done.wait [#allocation4], 1024  }
  0xed   :  { %1210 = vsyncadd [#allocation4], 4294966272 }
  0xee   :  { %1069 = vsyncpa [#allocation3], 1 }
  0xef   :  { %1070 = vsyncpa [#allocation4], 1 }

</bundles_post_ra>
